<compile_context>
chip_gen: v7x
topology: tpu7x:2x2x1
jax: 0.10.0
libtpu: 0.0.40
codegen_flags: <defaults>
</compile_context>

<pallas_src>
import functools

import jax
import jax.numpy as jnp
from jax import lax
from jax.experimental import pallas as pl
from jax.experimental.pallas import tpu as pltpu


def _ot_kernel(scal_ref, cost_ref, a_ref, b_ref, coords_t_ref, out_ref,
               *, n_iter: int, d: int):
    neg_inv_eps = scal_ref[0]     # -1/epsilon
    p = scal_ref[1]               # lmbda / (lmbda + epsilon)

    # k construction: single VPU multiply + EUP exp over the M x N block.
    k = jnp.exp(cost_ref[...] * neg_inv_eps)          # (M, N)
    kt = k.T                                          # (N, M): ONE transpose total

    a_row = a_ref[...]                                # (1, M) lane-dense
    b_row = b_ref[...]                                # (1, N) lane-dense
    log_a = jnp.log(a_row)
    log_b = jnp.log(b_row)

    n = b_row.shape[1]
    v0 = jnp.full((1, n), 1.0 / n, dtype=jnp.float32)

    def body(_, v_row):
        # kv_i = sum_j K_ij v_j   ->  (1,N) @ (N,M)
        kv = jnp.dot(v_row, kt, preferred_element_type=jnp.float32)   # (1, M)
        u_row = jnp.exp(p * (log_a - jnp.log(kv)))                    # (1, M)
        # ku_j = sum_i K_ij u_i   ->  (1,M) @ (M,N)
        ku = jnp.dot(u_row, k, preferred_element_type=jnp.float32)    # (1, N)
        return jnp.exp(p * (log_b - jnp.log(ku)))                     # (1, N)

    # n_iter is static -> fully unroll for LLO scheduling across iterations.
    v_row = lax.fori_loop(0, n_iter, body, v0, unroll=True)

    # Epilogue with t eliminated:
    #   out_id = sum_j K_ij v_j c_jd / sum_j K_ij v_j       (u_i cancels)
    # coords_t_ref = [coords^T ; ones] is (D+1, N); scale its columns by v
    # (lane-dense multiply), then one MXU matmul gives num and den together.
    cs = coords_t_ref[...] * v_row                                    # (D+1, N)
    nd = jnp.dot(cs, kt, preferred_element_type=jnp.float32)          # (D+1, M)
    den = nd[d:d + 1, :]                                              # (1, M)
    out_ref[...] = nd[:d, :] / den                                    # (D, M) lane-dense store


def optimal_transport_solver(cost, a, b, coords, *, epsilon: float,
                             lmbda: float, n_iter: int):
    """Dense branch of OptimalTransportSolver.forward as a Pallas TPU kernel."""
    cost = jnp.asarray(cost, jnp.float32)
    M, N = cost.shape
    a_row = jnp.asarray(a, jnp.float32).reshape(1, M)
    b_row = jnp.asarray(b, jnp.float32).reshape(1, N)
    coords = jnp.asarray(coords, jnp.float32)
    D = coords.shape[1]

    # (D+1, N): rows 0..D-1 = coordinate components, row D = ones (denominator).
    coords_t_aug = jnp.concatenate(
        [coords.T, jnp.ones((1, N), jnp.float32)], axis=0)

    eps = jnp.float32(epsilon)
    lam = jnp.float32(lmbda)
    scalars = jnp.stack([-1.0 / eps, lam / (lam + eps)]).astype(jnp.float32)

    # VMEM sizing: cost + k + kT (M*N f32 each) + small operands, with margin.
    fbytes = 4
    vmem_bytes = int(
        (3 * M * N + 2 * (D + 1) * N + (D + 1) * M + 2 * (M + N)) * fbytes * 1.5
    ) + (1 << 20)
    vmem_bytes = min(max(vmem_bytes, 4 << 20), 128 << 20)

    # TODO(synk): for problems where K cannot fit in VMEM (roughly >4K per side
    # on v7x), restructure to stream K by row-tiles from HBM (pltpu.emit_pipeline)
    # instead of full residency.
    kernel = functools.partial(_ot_kernel, n_iter=n_iter, d=D)
    out_t = pl.pallas_call(
        kernel,
        out_shape=jax.ShapeDtypeStruct((D, M), jnp.float32),
        in_specs=[
            pl.BlockSpec(memory_space=pltpu.MemorySpace.SMEM),   # [-1/eps, p]
            pl.BlockSpec(memory_space=pltpu.MemorySpace.VMEM),   # cost (M, N)
            pl.BlockSpec(memory_space=pltpu.MemorySpace.VMEM),   # a (1, M)
            pl.BlockSpec(memory_space=pltpu.MemorySpace.VMEM),   # b (1, N)
            pl.BlockSpec(memory_space=pltpu.MemorySpace.VMEM),   # coords^T aug (D+1, N)
        ],
        out_specs=pl.BlockSpec(memory_space=pltpu.MemorySpace.VMEM),
        compiler_params=pltpu.CompilerParams(vmem_limit_bytes=vmem_bytes),
    )(scalars, cost, a_row, b_row, coords_t_aug)
    return out_t.T                                    # (M, D)


def _reference(cost, a, b, coords, *, epsilon, lmbda, n_iter):
    """Pure-JAX reference mirroring the PyTorch dense branch."""
    cost = jnp.asarray(cost, jnp.float32)
    a = jnp.asarray(a, jnp.float32)
    b = jnp.asarray(b, jnp.float32)
    coords = jnp.asarray(coords, jnp.float32)
    k = jnp.exp(-cost / epsilon)
    u = jnp.ones_like(a) / a.size
    v = jnp.ones_like(b) / b.size
    p = lmbda / (lmbda + epsilon)
    for _ in range(n_iter):
        u = jnp.power(a / (k @ v), p)
        v = jnp.power(b / (k.T @ u), p)
    t = jnp.einsum('ij,i,j->ij', k, u, v)
    return (t @ coords) / t.sum(axis=-1)[..., None]


if __name__ == "__main__":
    # Deterministic "module parameters" (nn.Parameter(epsilon), nn.Parameter(lmbda))
    epsilon = 0.5
    lmbda = 1.0
    n_iter = 10

    # Small synthetic OT problem: M source points, N target points, 2-D coords.
    M, N, D = 128, 128, 2
    key = jax.random.PRNGKey(0)
    k_cost, k_a, k_b, k_c = jax.random.split(key, 4)

    cost = jax.random.uniform(k_cost, (M, N), jnp.float32, minval=0.1, maxval=2.0)
    a = jax.random.uniform(k_a, (M,), jnp.float32, minval=0.5, maxval=1.5)
    a = a / a.sum()
    b = jax.random.uniform(k_b, (N,), jnp.float32, minval=0.5, maxval=1.5)
    b = b / b.sum()
    coords = jax.random.normal(k_c, (N, D), jnp.float32)

    # TODO(synk): sparse-COO branch of forward() has no clean Pallas equivalent;
    # only the dense cost-matrix path is implemented here.

    out = optimal_transport_solver(cost, a, b, coords,
                                   epsilon=epsilon, lmbda=lmbda, n_iter=n_iter)
    out = jax.block_until_ready(out)

    ref = _reference(cost, a, b, coords,
                     epsilon=epsilon, lmbda=lmbda, n_iter=n_iter)
    assert out.shape == (M, D)
    assert jnp.allclose(out, ref, rtol=1e-3, atol=1e-4), "mismatch vs reference"

    print("KERNEL_OK")
</pallas_src>

<mosaic_0001>
module attributes {stable_mosaic.version = 11 : i64} {
  func.func @_ot_kernel(%arg0: memref<2xf32, #tpu.memory_space<smem>>, %arg1: memref<128x128xf32, #tpu.memory_space<vmem>>, %arg2: memref<1x128xf32, #tpu.memory_space<vmem>>, %arg3: memref<1x128xf32, #tpu.memory_space<vmem>>, %arg4: memref<3x128xf32, #tpu.memory_space<vmem>>, %arg5: memref<2x128xf32, #tpu.memory_space<vmem>>) attributes {dimension_semantics = [], scalar_prefetch = 0 : i64, scratch_operands = 0 : i64, tpu.core_type = #tpu.core_type<tc>} {
    %c0 = arith.constant 0 : index
    %0 = memref.load %arg0[%c0] : memref<2xf32, #tpu.memory_space<smem>>
    %c1 = arith.constant 1 : index
    %1 = memref.load %arg0[%c1] : memref<2xf32, #tpu.memory_space<smem>>
    %c0_0 = arith.constant 0 : index
    %c0_1 = arith.constant 0 : index
    %2 = vector.load %arg1[%c0_0, %c0_1] : memref<128x128xf32, #tpu.memory_space<vmem>>, vector<128x128xf32>
    %3 = vector.broadcast %0 : f32 to vector<128x128xf32>
    %4 = arith.mulf %2, %3 : vector<128x128xf32>
    %5 = math.exp %4 : vector<128x128xf32>
    %6 = tpu.transpose %5, [1, 0] : vector<128x128xf32> -> vector<128x128xf32>
    %c0_2 = arith.constant 0 : index
    %c0_3 = arith.constant 0 : index
    %7 = vector.load %arg2[%c0_2, %c0_3] : memref<1x128xf32, #tpu.memory_space<vmem>>, vector<1x128xf32>
    %c0_4 = arith.constant 0 : index
    %c0_5 = arith.constant 0 : index
    %8 = vector.load %arg3[%c0_4, %c0_5] : memref<1x128xf32, #tpu.memory_space<vmem>>, vector<1x128xf32>
    %9 = math.log %7 : vector<1x128xf32>
    %10 = math.log %8 : vector<1x128xf32>
    %cst = arith.constant 7.812500e-03 : f32
    %11 = vector.broadcast %cst : f32 to vector<1x128xf32>
    %c0_i32 = arith.constant 0 : i32
    %cst_6 = arith.constant dense<0.000000e+00> : vector<1x128xf32>
    %12 = tpu.matmul %11, %6, %cst_6 {dimension_numbers = #tpu.dot_dimension_numbers<[1], [0], [0], [1], [0, 0, 1, 1], [], []>} : vector<1x128xf32>, vector<128x128xf32>, vector<1x128xf32> -> vector<1x128xf32>
    %13 = math.log %12 : vector<1x128xf32>
    %14 = arith.subf %9, %13 : vector<1x128xf32>
    %15 = vector.broadcast %1 : f32 to vector<1x128xf32>
    %16 = arith.mulf %15, %14 : vector<1x128xf32>
    %17 = math.exp %16 : vector<1x128xf32>
    %cst_7 = arith.constant dense<0.000000e+00> : vector<1x128xf32>
    %18 = tpu.matmul %17, %5, %cst_7 {dimension_numbers = #tpu.dot_dimension_numbers<[1], [0], [0], [1], [0, 0, 1, 1], [], []>} : vector<1x128xf32>, vector<128x128xf32>, vector<1x128xf32> -> vector<1x128xf32>
    %19 = math.log %18 : vector<1x128xf32>
    %20 = arith.subf %10, %19 : vector<1x128xf32>
    %21 = vector.broadcast %1 : f32 to vector<1x128xf32>
    %22 = arith.mulf %21, %20 : vector<1x128xf32>
    %23 = math.exp %22 : vector<1x128xf32>
    %c1_i32 = arith.constant 1 : i32
    %cst_8 = arith.constant dense<0.000000e+00> : vector<1x128xf32>
    %24 = tpu.matmul %23, %6, %cst_8 {dimension_numbers = #tpu.dot_dimension_numbers<[1], [0], [0], [1], [0, 0, 1, 1], [], []>} : vector<1x128xf32>, vector<128x128xf32>, vector<1x128xf32> -> vector<1x128xf32>
    %25 = math.log %24 : vector<1x128xf32>
    %26 = arith.subf %9, %25 : vector<1x128xf32>
    %27 = vector.broadcast %1 : f32 to vector<1x128xf32>
    %28 = arith.mulf %27, %26 : vector<1x128xf32>
    %29 = math.exp %28 : vector<1x128xf32>
    %cst_9 = arith.constant dense<0.000000e+00> : vector<1x128xf32>
    %30 = tpu.matmul %29, %5, %cst_9 {dimension_numbers = #tpu.dot_dimension_numbers<[1], [0], [0], [1], [0, 0, 1, 1], [], []>} : vector<1x128xf32>, vector<128x128xf32>, vector<1x128xf32> -> vector<1x128xf32>
    %31 = math.log %30 : vector<1x128xf32>
    %32 = arith.subf %10, %31 : vector<1x128xf32>
    %33 = vector.broadcast %1 : f32 to vector<1x128xf32>
    %34 = arith.mulf %33, %32 : vector<1x128xf32>
    %35 = math.exp %34 : vector<1x128xf32>
    %c2_i32 = arith.constant 2 : i32
    %cst_10 = arith.constant dense<0.000000e+00> : vector<1x128xf32>
    %36 = tpu.matmul %35, %6, %cst_10 {dimension_numbers = #tpu.dot_dimension_numbers<[1], [0], [0], [1], [0, 0, 1, 1], [], []>} : vector<1x128xf32>, vector<128x128xf32>, vector<1x128xf32> -> vector<1x128xf32>
    %37 = math.log %36 : vector<1x128xf32>
    %38 = arith.subf %9, %37 : vector<1x128xf32>
    %39 = vector.broadcast %1 : f32 to vector<1x128xf32>
    %40 = arith.mulf %39, %38 : vector<1x128xf32>
    %41 = math.exp %40 : vector<1x128xf32>
    %cst_11 = arith.constant dense<0.000000e+00> : vector<1x128xf32>
    %42 = tpu.matmul %41, %5, %cst_11 {dimension_numbers = #tpu.dot_dimension_numbers<[1], [0], [0], [1], [0, 0, 1, 1], [], []>} : vector<1x128xf32>, vector<128x128xf32>, vector<1x128xf32> -> vector<1x128xf32>
    %43 = math.log %42 : vector<1x128xf32>
    %44 = arith.subf %10, %43 : vector<1x128xf32>
    %45 = vector.broadcast %1 : f32 to vector<1x128xf32>
    %46 = arith.mulf %45, %44 : vector<1x128xf32>
    %47 = math.exp %46 : vector<1x128xf32>
    %c3_i32 = arith.constant 3 : i32
    %cst_12 = arith.constant dense<0.000000e+00> : vector<1x128xf32>
    %48 = tpu.matmul %47, %6, %cst_12 {dimension_numbers = #tpu.dot_dimension_numbers<[1], [0], [0], [1], [0, 0, 1, 1], [], []>} : vector<1x128xf32>, vector<128x128xf32>, vector<1x128xf32> -> vector<1x128xf32>
    %49 = math.log %48 : vector<1x128xf32>
    %50 = arith.subf %9, %49 : vector<1x128xf32>
    %51 = vector.broadcast %1 : f32 to vector<1x128xf32>
    %52 = arith.mulf %51, %50 : vector<1x128xf32>
    %53 = math.exp %52 : vector<1x128xf32>
    %cst_13 = arith.constant dense<0.000000e+00> : vector<1x128xf32>
    %54 = tpu.matmul %53, %5, %cst_13 {dimension_numbers = #tpu.dot_dimension_numbers<[1], [0], [0], [1], [0, 0, 1, 1], [], []>} : vector<1x128xf32>, vector<128x128xf32>, vector<1x128xf32> -> vector<1x128xf32>
    %55 = math.log %54 : vector<1x128xf32>
    %56 = arith.subf %10, %55 : vector<1x128xf32>
    %57 = vector.broadcast %1 : f32 to vector<1x128xf32>
    %58 = arith.mulf %57, %56 : vector<1x128xf32>
    %59 = math.exp %58 : vector<1x128xf32>
    %c4_i32 = arith.constant 4 : i32
    %cst_14 = arith.constant dense<0.000000e+00> : vector<1x128xf32>
    %60 = tpu.matmul %59, %6, %cst_14 {dimension_numbers = #tpu.dot_dimension_numbers<[1], [0], [0], [1], [0, 0, 1, 1], [], []>} : vector<1x128xf32>, vector<128x128xf32>, vector<1x128xf32> -> vector<1x128xf32>
    %61 = math.log %60 : vector<1x128xf32>
    %62 = arith.subf %9, %61 : vector<1x128xf32>
    %63 = vector.broadcast %1 : f32 to vector<1x128xf32>
    %64 = arith.mulf %63, %62 : vector<1x128xf32>
    %65 = math.exp %64 : vector<1x128xf32>
    %cst_15 = arith.constant dense<0.000000e+00> : vector<1x128xf32>
    %66 = tpu.matmul %65, %5, %cst_15 {dimension_numbers = #tpu.dot_dimension_numbers<[1], [0], [0], [1], [0, 0, 1, 1], [], []>} : vector<1x128xf32>, vector<128x128xf32>, vector<1x128xf32> -> vector<1x128xf32>
    %67 = math.log %66 : vector<1x128xf32>
    %68 = arith.subf %10, %67 : vector<1x128xf32>
    %69 = vector.broadcast %1 : f32 to vector<1x128xf32>
    %70 = arith.mulf %69, %68 : vector<1x128xf32>
    %71 = math.exp %70 : vector<1x128xf32>
    %c5_i32 = arith.constant 5 : i32
    %cst_16 = arith.constant dense<0.000000e+00> : vector<1x128xf32>
    %72 = tpu.matmul %71, %6, %cst_16 {dimension_numbers = #tpu.dot_dimension_numbers<[1], [0], [0], [1], [0, 0, 1, 1], [], []>} : vector<1x128xf32>, vector<128x128xf32>, vector<1x128xf32> -> vector<1x128xf32>
    %73 = math.log %72 : vector<1x128xf32>
    %74 = arith.subf %9, %73 : vector<1x128xf32>
    %75 = vector.broadcast %1 : f32 to vector<1x128xf32>
    %76 = arith.mulf %75, %74 : vector<1x128xf32>
    %77 = math.exp %76 : vector<1x128xf32>
    %cst_17 = arith.constant dense<0.000000e+00> : vector<1x128xf32>
    %78 = tpu.matmul %77, %5, %cst_17 {dimension_numbers = #tpu.dot_dimension_numbers<[1], [0], [0], [1], [0, 0, 1, 1], [], []>} : vector<1x128xf32>, vector<128x128xf32>, vector<1x128xf32> -> vector<1x128xf32>
    %79 = math.log %78 : vector<1x128xf32>
    %80 = arith.subf %10, %79 : vector<1x128xf32>
    %81 = vector.broadcast %1 : f32 to vector<1x128xf32>
    %82 = arith.mulf %81, %80 : vector<1x128xf32>
    %83 = math.exp %82 : vector<1x128xf32>
    %c6_i32 = arith.constant 6 : i32
    %cst_18 = arith.constant dense<0.000000e+00> : vector<1x128xf32>
    %84 = tpu.matmul %83, %6, %cst_18 {dimension_numbers = #tpu.dot_dimension_numbers<[1], [0], [0], [1], [0, 0, 1, 1], [], []>} : vector<1x128xf32>, vector<128x128xf32>, vector<1x128xf32> -> vector<1x128xf32>
    %85 = math.log %84 : vector<1x128xf32>
    %86 = arith.subf %9, %85 : vector<1x128xf32>
    %87 = vector.broadcast %1 : f32 to vector<1x128xf32>
    %88 = arith.mulf %87, %86 : vector<1x128xf32>
    %89 = math.exp %88 : vector<1x128xf32>
    %cst_19 = arith.constant dense<0.000000e+00> : vector<1x128xf32>
    %90 = tpu.matmul %89, %5, %cst_19 {dimension_numbers = #tpu.dot_dimension_numbers<[1], [0], [0], [1], [0, 0, 1, 1], [], []>} : vector<1x128xf32>, vector<128x128xf32>, vector<1x128xf32> -> vector<1x128xf32>
    %91 = math.log %90 : vector<1x128xf32>
    %92 = arith.subf %10, %91 : vector<1x128xf32>
    %93 = vector.broadcast %1 : f32 to vector<1x128xf32>
    %94 = arith.mulf %93, %92 : vector<1x128xf32>
    %95 = math.exp %94 : vector<1x128xf32>
    %c7_i32 = arith.constant 7 : i32
    %cst_20 = arith.constant dense<0.000000e+00> : vector<1x128xf32>
    %96 = tpu.matmul %95, %6, %cst_20 {dimension_numbers = #tpu.dot_dimension_numbers<[1], [0], [0], [1], [0, 0, 1, 1], [], []>} : vector<1x128xf32>, vector<128x128xf32>, vector<1x128xf32> -> vector<1x128xf32>
    %97 = math.log %96 : vector<1x128xf32>
    %98 = arith.subf %9, %97 : vector<1x128xf32>
    %99 = vector.broadcast %1 : f32 to vector<1x128xf32>
    %100 = arith.mulf %99, %98 : vector<1x128xf32>
    %101 = math.exp %100 : vector<1x128xf32>
    %cst_21 = arith.constant dense<0.000000e+00> : vector<1x128xf32>
    %102 = tpu.matmul %101, %5, %cst_21 {dimension_numbers = #tpu.dot_dimension_numbers<[1], [0], [0], [1], [0, 0, 1, 1], [], []>} : vector<1x128xf32>, vector<128x128xf32>, vector<1x128xf32> -> vector<1x128xf32>
    %103 = math.log %102 : vector<1x128xf32>
    %104 = arith.subf %10, %103 : vector<1x128xf32>
    %105 = vector.broadcast %1 : f32 to vector<1x128xf32>
    %106 = arith.mulf %105, %104 : vector<1x128xf32>
    %107 = math.exp %106 : vector<1x128xf32>
    %c8_i32 = arith.constant 8 : i32
    %cst_22 = arith.constant dense<0.000000e+00> : vector<1x128xf32>
    %108 = tpu.matmul %107, %6, %cst_22 {dimension_numbers = #tpu.dot_dimension_numbers<[1], [0], [0], [1], [0, 0, 1, 1], [], []>} : vector<1x128xf32>, vector<128x128xf32>, vector<1x128xf32> -> vector<1x128xf32>
    %109 = math.log %108 : vector<1x128xf32>
    %110 = arith.subf %9, %109 : vector<1x128xf32>
    %111 = vector.broadcast %1 : f32 to vector<1x128xf32>
    %112 = arith.mulf %111, %110 : vector<1x128xf32>
    %113 = math.exp %112 : vector<1x128xf32>
    %cst_23 = arith.constant dense<0.000000e+00> : vector<1x128xf32>
    %114 = tpu.matmul %113, %5, %cst_23 {dimension_numbers = #tpu.dot_dimension_numbers<[1], [0], [0], [1], [0, 0, 1, 1], [], []>} : vector<1x128xf32>, vector<128x128xf32>, vector<1x128xf32> -> vector<1x128xf32>
    %115 = math.log %114 : vector<1x128xf32>
    %116 = arith.subf %10, %115 : vector<1x128xf32>
    %117 = vector.broadcast %1 : f32 to vector<1x128xf32>
    %118 = arith.mulf %117, %116 : vector<1x128xf32>
    %119 = math.exp %118 : vector<1x128xf32>
    %c9_i32 = arith.constant 9 : i32
    %cst_24 = arith.constant dense<0.000000e+00> : vector<1x128xf32>
    %120 = tpu.matmul %119, %6, %cst_24 {dimension_numbers = #tpu.dot_dimension_numbers<[1], [0], [0], [1], [0, 0, 1, 1], [], []>} : vector<1x128xf32>, vector<128x128xf32>, vector<1x128xf32> -> vector<1x128xf32>
    %121 = math.log %120 : vector<1x128xf32>
    %122 = arith.subf %9, %121 : vector<1x128xf32>
    %123 = vector.broadcast %1 : f32 to vector<1x128xf32>
    %124 = arith.mulf %123, %122 : vector<1x128xf32>
    %125 = math.exp %124 : vector<1x128xf32>
    %cst_25 = arith.constant dense<0.000000e+00> : vector<1x128xf32>
    %126 = tpu.matmul %125, %5, %cst_25 {dimension_numbers = #tpu.dot_dimension_numbers<[1], [0], [0], [1], [0, 0, 1, 1], [], []>} : vector<1x128xf32>, vector<128x128xf32>, vector<1x128xf32> -> vector<1x128xf32>
    %127 = math.log %126 : vector<1x128xf32>
    %128 = arith.subf %10, %127 : vector<1x128xf32>
    %129 = vector.broadcast %1 : f32 to vector<1x128xf32>
    %130 = arith.mulf %129, %128 : vector<1x128xf32>
    %131 = math.exp %130 : vector<1x128xf32>
    %c0_26 = arith.constant 0 : index
    %c0_27 = arith.constant 0 : index
    %132 = vector.load %arg4[%c0_26, %c0_27] : memref<3x128xf32, #tpu.memory_space<vmem>>, vector<3x128xf32>
    %133 = vector.broadcast %131 : vector<1x128xf32> to vector<3x128xf32>
    %134 = arith.mulf %132, %133 : vector<3x128xf32>
    %cst_28 = arith.constant dense<0.000000e+00> : vector<3x128xf32>
    %135 = tpu.matmul %134, %6, %cst_28 {dimension_numbers = #tpu.dot_dimension_numbers<[1], [0], [0], [1], [0, 0, 1, 1], [], []>} : vector<3x128xf32>, vector<128x128xf32>, vector<3x128xf32> -> vector<3x128xf32>
    %136 = vector.extract_strided_slice %135 {offsets = [2, 0], sizes = [1, 128], strides = [1, 1]} : vector<3x128xf32> to vector<1x128xf32>
    %137 = vector.extract_strided_slice %135 {offsets = [0, 0], sizes = [2, 128], strides = [1, 1]} : vector<3x128xf32> to vector<2x128xf32>
    %138 = vector.broadcast %136 : vector<1x128xf32> to vector<2x128xf32>
    %139 = arith.divf %137, %138 : vector<2x128xf32>
    %c0_29 = arith.constant 0 : index
    %c0_30 = arith.constant 0 : index
    %140 = vector.load %arg5[%c0_29, %c0_30] : memref<2x128xf32, #tpu.memory_space<vmem>>, vector<2x128xf32>
    tpu.vector_store %arg5[%c0_29, %c0_30], %139 {strides = array<i32>} : memref<2x128xf32, #tpu.memory_space<vmem>>, vector<2x128xf32>,
    return
  }
}

</mosaic_0001>

<bundles_post_ra>
// kernel: tpu_custom_call.1
= control target key start
LH: loop header
LB: loop body
LE: loop exit
PB: predicated region body
PF: predicated region fallthrough
CT: control target
= control target key end

     0   :  { %10 = vsyncpa [#allocation5], 0  ;;  %s4067_s0 = inlined_call_operand.hbm [shape: f32[2], index: 0, kind: input, shape index: {}]   ;;  %s4068_s1 = inlined_call_operand.hbm [shape: f32[128,128], index: 1, kind: input, shape index: {}]   ;;  %s4069_s2 = inlined_call_operand.vmem [shape: f32[1,128], index: 2, kind: input, shape index: {}]   ;;  %s4070_s3 = inlined_call_operand.vmem [shape: f32[1,128], index: 3, kind: input, shape index: {}]   ;;  %s4071_s4 = inlined_call_operand.vmem [shape: f32[3,128], index: 4, kind: input, shape index: {}]   ;;  %s4072_s5 = inlined_call_operand.hbm [shape: f32[2,128], index: 5, kind: output, shape index: {}]  }
   0x1   :  { %11 = vsyncpa [#allocation3], 0 }
   0x2   :  { %12 = vsyncpa [#allocation4], 0  ;;  %s3465_s20 = scalar_lea.hbm %s4067_s0, 16 }
   0x3   :  { %p3466_p0 = scmp.ne.s32.totalorder %s4067_s0, %s3465_s20  ;;  %p3469_p1 = scmp.lt.u32.totalorder %s3465_s20, %s4067_s0 }
   0x5   :  { %p3471_p2 = pnand %p3469_p1, %p3466_p0 }
   0x7   :  { %3474 = shalt.err (!%p3471_p2)
}
   0x8   :  { %s3525_s25 = smov [#allocation2]   ;;  %s3526_s28 = smov [#allocation6]  }
   0x9   :  { %20 = dma.hbm_to_smem %s4067_s0, 16, %s3525_s25, [#allocation5]  }
   0xa   :  { %s26_s29 = sshll.u32 %s3526_s28, 4  ;;  %s3475_s7 = scalar_lea.hbm %s4068_s1, 2048  ;;  %s27_s29 = int_to_ptr.vmem [resolvable:$true] %s26_s29 }
   0xb   :  { %p3476_p3 = scmp.ne.s32.totalorder %s4068_s1, %s3475_s7  ;;  %p3479_p4 = scmp.lt.u32.totalorder %s3475_s7, %s4068_s1 }
   0xd   :  { %p3481_p5 = pnand %p3479_p4, %p3476_p3 }
   0xf   :  { %3484 = shalt.err (!%p3481_p5)
}
  0x10   :  { %s3485_s12 = scalar_lea.vmem %s27_s29, 2048  ;;  %p3490_p7 = scmp.lt.s32.totalorder %s27_s29, %s27_s29 }
  0x11   :  { %p3486_p6 = scmp.ne.s32.totalorder %s27_s29, %s3485_s12  ;;  %p3491_p8 = scmp.lt.s32.totalorder %s3485_s12, %s3485_s12 }
  0x13   :  { %p3492_p9 = por %p3491_p8, %p3490_p7 }
  0x15   :  { %p3493_p10 = pnand %p3492_p9, %p3486_p6 }
  0x17   :  { %3496 = shalt.err (!%p3493_p10)
}
  0x18   :  { %s3527_s0 = smov 128   ;;  %s3528_s13 = smov 8  }
  0x19   :  { %32 = dma.hbm_to_vmem [thread:$0]  %s4068_s1, 2048, %s27_s29, [#allocation3], %s3527_s0, %s3527_s0, %s3528_s13  }
  0x1a   :  { %3519 = dma.done.wait [#allocation5], 16  }
  0x1b   :  { %3520 = vsyncadd [#allocation5], 4294967280 }
  0x1c   :  { %3521 = dma.done.wait [#allocation3], 2048  }
  0x1d   :  { %3522 = vsyncadd [#allocation3], 4294965248 }
  0x1e   :  { %45 = sfence }
  0x1f   :  { %s46_s16 = sld [smem:[#allocation2]]  ;;  %v3529_v0 = vmov 0.0|0.0   ;;  %vm3530_vm0 = vmmov 0   ;;  %v3531_v1 = vmov 0.0   ;;  %v48_v2 = vld [vmem:[#allocation6] sm:$0xff]  ;;  %v49_v3 = vld [vmem:[#allocation6 + $0x8] sm:$0xff] }
  0x20   :  { %2834 = vmatprep.subr.bf16.mxu0 %v3529_v0  ;;  %2858 = vmatprep.subr.bf16.mxu1 %v3529_v0  ;;  %v50_v4 = vld [vmem:[#allocation6 + $0x10] sm:$0xff]  ;;  %v51_v5 = vld [vmem:[#allocation6 + $0x18] sm:$0xff]  ;;  %v52_v7 = vld [vmem:[#allocation6 + $0x20] sm:$0xff]  ;;  %s1741_s18 = sld [smem:[#allocation2 + $0x1]]  ;;  %s3533_s21 = smov [#allocation7]  }
  0x21   :  { %2131 = vmatprep.mubr.msk.f32.mxu0 %vm3530_vm0, %v3531_v1  ;;  %2166 = vmatprep.mubr.msk.f32.mxu1 %vm3530_vm0, %v3531_v1  ;;  %v53_v12 = vld [vmem:[#allocation6 + $0x28] sm:$0xff]  ;;  %v54_v19 = vld [vmem:[#allocation6 + $0x30] sm:$0xff]  ;;  %v55_v20 = vld [vmem:[#allocation6 + $0x38] sm:$0xff]  ;;  %s1731_s22 = sshll.u32 %s3533_s21, 4  ;;  %s1732_s22 = int_to_ptr.vmem [resolvable:$true] %s1731_s22 }
  0x22   :  { %v56_v25 = vld [vmem:[#allocation6 + $0x40] sm:$0xff]  ;;  %v57_v26 = vld [vmem:[#allocation6 + $0x48] sm:$0xff]  ;;  %v58_v31 = vld [vmem:[#allocation6 + $0x50] sm:$0xff]  ;;  %s3497_s23 = scalar_lea.vmem %s1732_s22, 32  ;;  %p3502_p12 = scmp.lt.s32.totalorder %s1732_s22, %s1732_s22 }
  0x23   :  { %v59_v32 = vld [vmem:[#allocation6 + $0x58] sm:$0xff]  ;;  %v60_v39 = vld [vmem:[#allocation6 + $0x60] sm:$0xff]  ;;  %v61_v42 = vld [vmem:[#allocation6 + $0x68] sm:$0xff]  ;;  %p3498_p11 = scmp.ne.s32.totalorder %s1732_s22, %s3497_s23  ;;  %p3503_p13 = scmp.lt.s32.totalorder %s3497_s23, %s3497_s23 }
  0x24   :  { %v62_v48 = vld [vmem:[#allocation6 + $0x70] sm:$0xff]  ;;  %v63_v51 = vld [vmem:[#allocation6 + $0x78] sm:$0xff] }
  0x25   :  { %v3594_v6 = vstv %s46_s16  ;;  %p3504_p0 = por %p3503_p13, %p3502_p12 }
  0x26   :  { %v65_v8 = vmul.f32 %v3594_v6, %v48_v2  ;;  %v66_v9 = vmul.f32 %v3594_v6, %v49_v3  ;;  %v67_v10 = vmul.f32 %v3594_v6, %v50_v4  ;;  %v68_v11 = vmul.f32 %v3594_v6, %v51_v5 }
  0x27   :  { %v69_v16 = vmul.f32 %v3594_v6, %v52_v7  ;;  %v70_v18 = vmul.f32 %v3594_v6, %v53_v12  ;;  %v71_v22 = vmul.f32 %v3594_v6, %v54_v19  ;;  %v72_v24 = vmul.f32 %v3594_v6, %v55_v20  ;;  %p3505_p1 = pnand %p3504_p0, %p3498_p11 }
  0x28   :  { %v81_v13 = vmul.f32 1.442695, %v65_v8  ;;  %v83_v14 = vmul.f32 1.442695, %v66_v9  ;;  %v85_v15 = vmul.f32 1.442695, %v67_v10  ;;  %v73_v28 = vmul.f32 %v3594_v6, %v56_v25 }
  0x29   :  { %v87_v17 = vmul.f32 1.442695, %v68_v11  ;;  %v89_v21 = vmul.f32 1.442695, %v69_v16  ;;  %v91_v23 = vmul.f32 1.442695, %v70_v18  ;;  %v74_v30 = vmul.f32 %v3594_v6, %v57_v26 }
  0x2a   :  { %3347 = vpow2.f32 %v81_v13  ;;  %v93_v27 = vmul.f32 1.442695, %v71_v22  ;;  %v95_v29 = vmul.f32 1.442695, %v72_v24  ;;  %v97_v34 = vmul.f32 1.442695, %v73_v28 }
  0x2b   :  { %3349 = vpow2.f32 %v83_v14  ;;  %v75_v35 = vmul.f32 %v3594_v6, %v58_v31  ;;  %v99_v37 = vmul.f32 1.442695, %v74_v30  ;;  %v76_v38 = vmul.f32 %v3594_v6, %v59_v32  ;;  %v113_v14 = vld [vmem:[%s4069_s2] sm:$0x1] }
  0x2c   :  { %3351 = vpow2.f32 %v85_v15  ;;  %v77_v45 = vmul.f32 %v3594_v6, %v60_v39  ;;  %v78_v47 = vmul.f32 %v3594_v6, %v61_v42  ;;  %v79_v54 = vmul.f32 %v3594_v6, %v62_v48  ;;  %v114_v26 = vld [vmem:[%s4070_s3] sm:$0x1] }
  0x2d   :  { %3353 = vpow2.f32 %v87_v17  ;;  %v101_v44 = vmul.f32 1.442695, %v75_v35  ;;  %v103_v46 = vmul.f32 1.442695, %v76_v38  ;;  %v80_v56 = vmul.f32 %v3594_v6, %v63_v51 }
  0x2e   :  { %3355 = vpow2.f32 %v89_v21  ;;  %v105_v53 = vmul.f32 1.442695, %v77_v45  ;;  %v107_v55 = vmul.f32 1.442695, %v78_v47  ;;  %v109_v60 = vmul.f32 1.442695, %v79_v54 }
  0x2f   :  { %3357 = vpow2.f32 %v91_v23  ;;  %v111_v61 = vmul.f32 1.442695, %v80_v56  ;;  %v3532_v13 = vmov 0.0078125   ;;  %v3683_v21 = vstv %s1741_s18 }
  0x30   :  { %3359 = vpow2.f32 %v93_v27 }
  0x31   :  { %3361 = vpow2.f32 %v95_v29 }
  0x32   :  { %3363 = vpow2.f32 %v97_v34 }
  0x33   :  { %3365 = vpow2.f32 %v99_v37 }
  0x34   :  { %v3348_v33 = vpop.eup %3347  ;;  %3367 = vpow2.f32 %v101_v44 }
  0x35   :  { %v3350_v36 = vpop.eup %3349  ;;  %3369 = vpow2.f32 %v103_v46 }
  0x36   :  { %v3352_v40 = vpop.eup %3351  ;;  %v3608_v41 = vpack.c.bf16 %v3350_v36, %v3348_v33  ;;  %3371 = vpow2.f32 %v105_v53 }
  0x37   :  { %v3354_v43 = vpop.eup %3353  ;;  %3373 = vpow2.f32 %v107_v55 }
  0x38   :  { %2836 = vmatpush3.bf16.xpose.msra.mxu0 %v3608_v41  ;;  %2860 = vmatpush3.bf16.msra.mxu1 %v3608_v41  ;;  %v3356_v49 = vpop.eup %3355  ;;  %v3616_v50 = vpack.c.bf16 %v3354_v43, %v3352_v40  ;;  %3375 = vpow2.f32 %v109_v60 }
  0x39   :  { %2837 = vmatprep.subr.bf16.mxu0 %v3529_v0  ;;  %2861 = vmatprep.subr.bf16.mxu1 %v3529_v0  ;;  %v3358_v52 = vpop.eup %3357  ;;  %3377 = vpow2.f32 %v111_v61 }
  0x3a   :  { %v3360_v57 = vpop.eup %3359  ;;  %v3622_v58 = vpack.c.bf16 %v3358_v52, %v3356_v49  ;;  %3379 = vlog2.f32 %v113_v14 }
  0x3b   :  { %v3362_v59 = vpop.eup %3361 }
  0x3c   :  { %2863 = vmatpush3.bf16.msra.mxu1 %v3616_v50  ;;  %v3364_v62 = vpop.eup %3363  ;;  %v3628_v63 = vpack.c.bf16 %v3362_v59, %v3360_v57 }
  0x3d   :  { %2864 = vmatprep.subr.bf16.mxu1 %v3529_v0  ;;  %v3366_v2 = vpop.eup %3365 }
  0x3e   :  { %v3368_v3 = vpop.eup %3367  ;;  %v3632_v4 = vpack.c.bf16 %v3366_v2, %v3364_v62 }
  0x3f   :  { %v3370_v5 = vpop.eup %3369 }
  0x40   :  { %2839 = vmatpush3.bf16.xpose.msra.mxu0 %v3616_v50  ;;  %2866 = vmatpush3.bf16.msra.mxu1 %v3622_v58  ;;  %v3372_v6 = vpop.eup %3371  ;;  %v3638_v7 = vpack.c.bf16 %v3370_v5, %v3368_v3 }
  0x41   :  { %2840 = vmatprep.subr.bf16.mxu0 %v3529_v0  ;;  %2867 = vmatprep.subr.bf16.mxu1 %v3529_v0  ;;  %v3374_v8 = vpop.eup %3373 }
  0x42   :  { %v3376_v9 = vpop.eup %3375  ;;  %v3642_v10 = vpack.c.bf16 %v3374_v8, %v3372_v6 }
  0x43   :  { %v3378_v11 = vpop.eup %3377 }
  0x44   :  { %2869 = vmatpush3.bf16.msra.mxu1 %v3628_v63  ;;  %v3648_v12 = vpack.c.bf16 %v3378_v11, %v3376_v9  ;;  %v3380_v17 = vpop.eup %3379 }
  0x45   :  { %2870 = vmatprep.subr.bf16.mxu1 %v3529_v0  ;;  %v3681_v18 = vmul.f32 0.6931472, %v3380_v17 }
  0x48   :  { %2842 = vmatpush3.bf16.xpose.msra.mxu0 %v3622_v58  ;;  %2872 = vmatpush3.bf16.msra.mxu1 %v3632_v4 }
  0x49   :  { %2843 = vmatprep.subr.bf16.mxu0 %v3529_v0  ;;  %2873 = vmatprep.subr.bf16.mxu1 %v3529_v0 }
  0x4c   :  { %2875 = vmatpush3.bf16.msra.mxu1 %v3638_v7 }
  0x4d   :  { %2876 = vmatprep.subr.bf16.mxu1 %v3529_v0 }
  0x50   :  { %2845 = vmatpush3.bf16.xpose.msra.mxu0 %v3628_v63  ;;  %2878 = vmatpush3.bf16.msra.mxu1 %v3642_v10 }
  0x51   :  { %2846 = vmatprep.subr.bf16.mxu0 %v3529_v0  ;;  %2879 = vmatprep.subr.bf16.mxu1 %v3529_v0 }
  0x54   :  { %2881 = vmatpush3.bf16.msra.mxu1 %v3648_v12 }
  0x55   :  { %2882 = vmatprep.subr.bf16.mxu1 %v3529_v0 }
  0x58   :  { %2848 = vmatpush3.bf16.xpose.msra.mxu0 %v3632_v4 }
  0x59   :  { %2849 = vmatprep.subr.bf16.mxu0 %v3529_v0 }
  0x60   :  { %2851 = vmatpush3.bf16.xpose.msra.mxu0 %v3638_v7 }
  0x61   :  { %2852 = vmatprep.subr.bf16.mxu0 %v3529_v0 }
  0x68   :  { %2854 = vmatpush3.bf16.xpose.msra.mxu0 %v3642_v10 }
  0x69   :  { %2855 = vmatprep.subr.bf16.mxu0 %v3529_v0 }
  0x70   :  { %2857 = vmatpush3.bf16.xpose.msra.mxu0 %v3648_v12 }
  0x71   :  { %2930 = vmatprep.subr.bf16.mxu0 %v3529_v0 }
  0x77   :  { %2132 = vmatmul.mubr.f32.vlgmr.msra.gmra.mrb[0].mxu0 %v3532_v13 }
  0x78   :  { %2932 = vmatpush3.bf16.xpose.msra.mxu0 %v3608_v41  ;;  %2271 = vmatprep.mubr.msk.f32.mxu0 %vm3530_vm0, %v3531_v1 }
  0x79   :  { %2933 = vmatprep.subr.bf16.mxu0 %v3529_v0 }
  0x80   :  { %2935 = vmatpush3.bf16.xpose.msra.mxu0 %v3616_v50 }
  0x81   :  { %2936 = vmatprep.subr.bf16.mxu0 %v3529_v0 }
  0x88   :  { %2938 = vmatpush3.bf16.xpose.msra.mxu0 %v3622_v58 }
  0x89   :  { %2939 = vmatprep.subr.bf16.mxu0 %v3529_v0 }
  0x90   :  { %2941 = vmatpush3.bf16.xpose.msra.mxu0 %v3628_v63 }
  0x91   :  { %2942 = vmatprep.subr.bf16.mxu0 %v3529_v0 }
  0x98   :  { %2944 = vmatpush3.bf16.xpose.msra.mxu0 %v3632_v4 }
  0x99   :  { %2945 = vmatprep.subr.bf16.mxu0 %v3529_v0 }
  0xa0   :  { %2947 = vmatpush3.bf16.xpose.msra.mxu0 %v3638_v7 }
  0xa1   :  { %2948 = vmatprep.subr.bf16.mxu0 %v3529_v0 }
  0xa8   :  { %2950 = vmatpush3.bf16.xpose.msra.mxu0 %v3642_v10 }
  0xa9   :  { %2951 = vmatprep.subr.bf16.mxu0 %v3529_v0 }
  0xb0   :  { %2953 = vmatpush3.bf16.xpose.msra.mxu0 %v3648_v12 }
  0xb1   :  { %3002 = vmatprep.subr.bf16.mxu0 %v3529_v0 }
 0x14a   :  { %v185_v15 = vpop.f32.mrb[0].mxu0 }
 0x14b   :  { %3381 = vlog2.f32 %v185_v15  ;;  %v2133_v16 = vpop.f32.mrb[1].mxu0 }
 0x155   :  { %v3382_v19 = vpop.eup %3381 }
 0x156   :  { %v190_v20 = vmul.f32 0.6931472, %v3382_v19 }
 0x158   :  { %v191_v22 = vsub.f32 %v3681_v18, %v190_v20 }
 0x15a   :  { %v193_v23 = vmul.f32 %v3683_v21, %v191_v22 }
 0x15c   :  { %v194_v24 = vmul.f32 1.442695, %v193_v23 }
 0x15e   :  { %3383 = vpow2.f32 %v194_v24 }
 0x15f   :  { %3385 = vlog2.f32 %v114_v26 }
 0x168   :  { %v3384_v25 = vpop.eup %3383 }
 0x169   :  { %2167 = vmatmul.mubr.f32.vlgmr.msra.gmra.mrb[0].mxu1 %v3384_v25  ;;  %v3386_v29 = vpop.eup %3385 }
 0x16a   :  { %2884 = vmatpush3.bf16.xpose.msra.mxu1 %v3608_v41  ;;  %2201 = vmatprep.mubr.msk.f32.mxu1 %vm3530_vm0, %v3531_v1  ;;  %v3708_v30 = vmul.f32 0.6931472, %v3386_v29 }
 0x16b   :  { %2885 = vmatprep.subr.bf16.mxu1 %v3529_v0 }
 0x172   :  { %2887 = vmatpush3.bf16.xpose.msra.mxu1 %v3616_v50 }
 0x173   :  { %2888 = vmatprep.subr.bf16.mxu1 %v3529_v0 }
 0x17a   :  { %2890 = vmatpush3.bf16.xpose.msra.mxu1 %v3622_v58 }
 0x17b   :  { %2891 = vmatprep.subr.bf16.mxu1 %v3529_v0 }
 0x182   :  { %2893 = vmatpush3.bf16.xpose.msra.mxu1 %v3628_v63 }
 0x183   :  { %2894 = vmatprep.subr.bf16.mxu1 %v3529_v0 }
 0x18a   :  { %2896 = vmatpush3.bf16.xpose.msra.mxu1 %v3632_v4 }
 0x18b   :  { %2897 = vmatprep.subr.bf16.mxu1 %v3529_v0 }
 0x192   :  { %2899 = vmatpush3.bf16.xpose.msra.mxu1 %v3638_v7 }
 0x193   :  { %2900 = vmatprep.subr.bf16.mxu1 %v3529_v0 }
 0x19a   :  { %2902 = vmatpush3.bf16.xpose.msra.mxu1 %v3642_v10 }
 0x19b   :  { %2903 = vmatprep.subr.bf16.mxu1 %v3529_v0 }
 0x1a2   :  { %2905 = vmatpush3.bf16.xpose.msra.mxu1 %v3648_v12 }
 0x1a3   :  { %2906 = vmatprep.subr.bf16.mxu1 %v3529_v0 }
 0x23c   :  { %v262_v27 = vpop.f32.mrb[0].mxu1 }
 0x23d   :  { %3387 = vlog2.f32 %v262_v27  ;;  %v2168_v28 = vpop.f32.mrb[1].mxu1 }
 0x247   :  { %v3388_v31 = vpop.eup %3387 }
 0x248   :  { %v267_v32 = vmul.f32 0.6931472, %v3388_v31 }
 0x24a   :  { %v268_v33 = vsub.f32 %v3708_v30, %v267_v32 }
 0x24c   :  { %v269_v34 = vmul.f32 %v268_v33, %v3683_v21 }
 0x24e   :  { %v270_v35 = vmul.f32 1.442695, %v269_v34 }
 0x250   :  { %3389 = vpow2.f32 %v270_v35 }
 0x25a   :  { %v3390_v36 = vpop.eup %3389 }
 0x25b   :  { %2202 = vmatmul.mubr.f32.vlgmr.msra.gmra.mrb[2].mxu1 %v3390_v36 }
 0x25c   :  { %2908 = vmatpush3.bf16.msra.mxu1 %v3608_v41  ;;  %2236 = vmatprep.mubr.msk.f32.mxu1 %vm3530_vm0, %v3531_v1 }
 0x25d   :  { %2909 = vmatprep.subr.bf16.mxu1 %v3529_v0 }
 0x260   :  { %2911 = vmatpush3.bf16.msra.mxu1 %v3616_v50 }
 0x261   :  { %2912 = vmatprep.subr.bf16.mxu1 %v3529_v0 }
 0x264   :  { %2914 = vmatpush3.bf16.msra.mxu1 %v3622_v58 }
 0x265   :  { %2915 = vmatprep.subr.bf16.mxu1 %v3529_v0 }
 0x268   :  { %2917 = vmatpush3.bf16.msra.mxu1 %v3628_v63 }
 0x269   :  { %2918 = vmatprep.subr.bf16.mxu1 %v3529_v0 }
 0x26c   :  { %2920 = vmatpush3.bf16.msra.mxu1 %v3632_v4 }
 0x26d   :  { %2921 = vmatprep.subr.bf16.mxu1 %v3529_v0 }
 0x270   :  { %2923 = vmatpush3.bf16.msra.mxu1 %v3638_v7 }
 0x271   :  { %2924 = vmatprep.subr.bf16.mxu1 %v3529_v0 }
 0x274   :  { %2926 = vmatpush3.bf16.msra.mxu1 %v3642_v10 }
 0x275   :  { %2927 = vmatprep.subr.bf16.mxu1 %v3529_v0 }
 0x278   :  { %2929 = vmatpush3.bf16.msra.mxu1 %v3648_v12 }
 0x279   :  { %2954 = vmatprep.subr.bf16.mxu1 %v3529_v0 }
 0x32e   :  { %v338_v37 = vpop.f32.mrb[2].mxu1 }
 0x32f   :  { %3391 = vlog2.f32 %v338_v37  ;;  %v2203_v38 = vpop.f32.mrb[3].mxu1 }
 0x339   :  { %v3392_v39 = vpop.eup %3391 }
 0x33a   :  { %v343_v40 = vmul.f32 0.6931472, %v3392_v39 }
 0x33c   :  { %v344_v42 = vsub.f32 %v3681_v18, %v343_v40 }
 0x33e   :  { %v345_v43 = vmul.f32 %v344_v42, %v3683_v21 }
 0x340   :  { %v346_v44 = vmul.f32 1.442695, %v345_v43 }
 0x342   :  { %3393 = vpow2.f32 %v346_v44 }
 0x34c   :  { %v3394_v45 = vpop.eup %3393 }
 0x34d   :  { %2237 = vmatmul.mubr.f32.vlgmr.msra.gmra.mrb[4].mxu1 %v3394_v45 }
 0x34e   :  { %2956 = vmatpush3.bf16.msra.mxu1 %v3608_v41  ;;  %2306 = vmatprep.mubr.msk.f32.mxu1 %vm3530_vm0, %v3531_v1 }
 0x34f   :  { %2957 = vmatprep.subr.bf16.mxu1 %v3529_v0 }
 0x352   :  { %2959 = vmatpush3.bf16.msra.mxu1 %v3616_v50 }
 0x353   :  { %2960 = vmatprep.subr.bf16.mxu1 %v3529_v0 }
 0x356   :  { %2962 = vmatpush3.bf16.msra.mxu1 %v3622_v58 }
 0x357   :  { %2963 = vmatprep.subr.bf16.mxu1 %v3529_v0 }
 0x35a   :  { %2965 = vmatpush3.bf16.msra.mxu1 %v3628_v63 }
 0x35b   :  { %2966 = vmatprep.subr.bf16.mxu1 %v3529_v0 }
 0x35e   :  { %2968 = vmatpush3.bf16.msra.mxu1 %v3632_v4 }
 0x35f   :  { %2969 = vmatprep.subr.bf16.mxu1 %v3529_v0 }
 0x362   :  { %2971 = vmatpush3.bf16.msra.mxu1 %v3638_v7 }
 0x363   :  { %2972 = vmatprep.subr.bf16.mxu1 %v3529_v0 }
 0x366   :  { %2974 = vmatpush3.bf16.msra.mxu1 %v3642_v10 }
 0x367   :  { %2975 = vmatprep.subr.bf16.mxu1 %v3529_v0 }
 0x36a   :  { %2977 = vmatpush3.bf16.msra.mxu1 %v3648_v12 }
 0x36b   :  { %2978 = vmatprep.subr.bf16.mxu1 %v3529_v0 }
 0x420   :  { %v414_v46 = vpop.f32.mrb[4].mxu1 }
 0x421   :  { %3395 = vlog2.f32 %v414_v46  ;;  %v2238_v47 = vpop.f32.mrb[5].mxu1 }
 0x42b   :  { %v3396_v48 = vpop.eup %3395 }
 0x42c   :  { %v419_v49 = vmul.f32 0.6931472, %v3396_v48 }
 0x42e   :  { %v420_v51 = vsub.f32 %v3708_v30, %v419_v49 }
 0x430   :  { %v421_v52 = vmul.f32 %v420_v51, %v3683_v21 }
 0x432   :  { %v422_v53 = vmul.f32 1.442695, %v421_v52 }
 0x434   :  { %3397 = vpow2.f32 %v422_v53 }
 0x43e   :  { %v3398_v54 = vpop.eup %3397 }
 0x43f   :  { %2272 = vmatmul.mubr.f32.vlgmr.msra.gmra.mrb[2].mxu0 %v3398_v54 }
 0x440   :  { %3004 = vmatpush3.bf16.msra.mxu0 %v3608_v41  ;;  %2376 = vmatprep.mubr.msk.f32.mxu0 %vm3530_vm0, %v3531_v1 }
 0x441   :  { %3005 = vmatprep.subr.bf16.mxu0 %v3529_v0 }
 0x444   :  { %3007 = vmatpush3.bf16.msra.mxu0 %v3616_v50 }
 0x445   :  { %3008 = vmatprep.subr.bf16.mxu0 %v3529_v0 }
 0x448   :  { %3010 = vmatpush3.bf16.msra.mxu0 %v3622_v58 }
 0x449   :  { %3011 = vmatprep.subr.bf16.mxu0 %v3529_v0 }
 0x44c   :  { %3013 = vmatpush3.bf16.msra.mxu0 %v3628_v63 }
 0x44d   :  { %3014 = vmatprep.subr.bf16.mxu0 %v3529_v0 }
 0x450   :  { %3016 = vmatpush3.bf16.msra.mxu0 %v3632_v4 }
 0x451   :  { %3017 = vmatprep.subr.bf16.mxu0 %v3529_v0 }
 0x454   :  { %3019 = vmatpush3.bf16.msra.mxu0 %v3638_v7 }
 0x455   :  { %3020 = vmatprep.subr.bf16.mxu0 %v3529_v0 }
 0x458   :  { %3022 = vmatpush3.bf16.msra.mxu0 %v3642_v10 }
 0x459   :  { %3023 = vmatprep.subr.bf16.mxu0 %v3529_v0 }
 0x45c   :  { %3025 = vmatpush3.bf16.msra.mxu0 %v3648_v12 }
 0x45d   :  { %3026 = vmatprep.subr.bf16.mxu0 %v3529_v0 }
 0x512   :  { %v490_v55 = vpop.f32.mrb[2].mxu0 }
 0x513   :  { %3399 = vlog2.f32 %v490_v55  ;;  %v2273_v56 = vpop.f32.mrb[3].mxu0 }
 0x51d   :  { %v3400_v57 = vpop.eup %3399 }
 0x51e   :  { %v495_v59 = vmul.f32 0.6931472, %v3400_v57 }
 0x520   :  { %v496_v60 = vsub.f32 %v3681_v18, %v495_v59 }
 0x522   :  { %v497_v61 = vmul.f32 %v496_v60, %v3683_v21 }
 0x524   :  { %v498_v62 = vmul.f32 1.442695, %v497_v61 }
 0x526   :  { %3401 = vpow2.f32 %v498_v62 }
 0x530   :  { %v3402_v2 = vpop.eup %3401 }
 0x531   :  { %2307 = vmatmul.mubr.f32.vlgmr.msra.gmra.mrb[6].mxu1 %v3402_v2 }
 0x532   :  { %2980 = vmatpush3.bf16.xpose.msra.mxu1 %v3608_v41  ;;  %2341 = vmatprep.mubr.msk.f32.mxu1 %vm3530_vm0, %v3531_v1 }
 0x533   :  { %2981 = vmatprep.subr.bf16.mxu1 %v3529_v0 }
 0x53a   :  { %2983 = vmatpush3.bf16.xpose.msra.mxu1 %v3616_v50 }
 0x53b   :  { %2984 = vmatprep.subr.bf16.mxu1 %v3529_v0 }
 0x542   :  { %2986 = vmatpush3.bf16.xpose.msra.mxu1 %v3622_v58 }
 0x543   :  { %2987 = vmatprep.subr.bf16.mxu1 %v3529_v0 }
 0x54a   :  { %2989 = vmatpush3.bf16.xpose.msra.mxu1 %v3628_v63 }
 0x54b   :  { %2990 = vmatprep.subr.bf16.mxu1 %v3529_v0 }
 0x552   :  { %2992 = vmatpush3.bf16.xpose.msra.mxu1 %v3632_v4 }
 0x553   :  { %2993 = vmatprep.subr.bf16.mxu1 %v3529_v0 }
 0x55a   :  { %2995 = vmatpush3.bf16.xpose.msra.mxu1 %v3638_v7 }
 0x55b   :  { %2996 = vmatprep.subr.bf16.mxu1 %v3529_v0 }
 0x562   :  { %2998 = vmatpush3.bf16.xpose.msra.mxu1 %v3642_v10 }
 0x563   :  { %2999 = vmatprep.subr.bf16.mxu1 %v3529_v0 }
 0x56a   :  { %3001 = vmatpush3.bf16.xpose.msra.mxu1 %v3648_v12 }
 0x56b   :  { %3050 = vmatprep.subr.bf16.mxu1 %v3529_v0 }
 0x604   :  { %v566_v3 = vpop.f32.mrb[6].mxu1 }
 0x605   :  { %3403 = vlog2.f32 %v566_v3  ;;  %v2308_v5 = vpop.f32.mrb[7].mxu1 }
 0x60f   :  { %v3404_v6 = vpop.eup %3403 }
 0x610   :  { %v571_v8 = vmul.f32 0.6931472, %v3404_v6 }
 0x612   :  { %v572_v9 = vsub.f32 %v3708_v30, %v571_v8 }
 0x614   :  { %v573_v11 = vmul.f32 %v572_v9, %v3683_v21 }
 0x616   :  { %v574_v13 = vmul.f32 1.442695, %v573_v11 }
 0x618   :  { %3405 = vpow2.f32 %v574_v13 }
 0x622   :  { %v3406_v14 = vpop.eup %3405 }
 0x623   :  { %2342 = vmatmul.mubr.f32.vlgmr.msra.gmra.mrb[8].mxu1 %v3406_v14 }
 0x624   :  { %3052 = vmatpush3.bf16.msra.mxu1 %v3608_v41  ;;  %2446 = vmatprep.mubr.msk.f32.mxu1 %vm3530_vm0, %v3531_v1 }
 0x625   :  { %3053 = vmatprep.subr.bf16.mxu1 %v3529_v0 }
 0x628   :  { %3055 = vmatpush3.bf16.msra.mxu1 %v3616_v50 }
 0x629   :  { %3056 = vmatprep.subr.bf16.mxu1 %v3529_v0 }
 0x62c   :  { %3058 = vmatpush3.bf16.msra.mxu1 %v3622_v58 }
 0x62d   :  { %3059 = vmatprep.subr.bf16.mxu1 %v3529_v0 }
 0x630   :  { %3061 = vmatpush3.bf16.msra.mxu1 %v3628_v63 }
 0x631   :  { %3062 = vmatprep.subr.bf16.mxu1 %v3529_v0 }
 0x634   :  { %3064 = vmatpush3.bf16.msra.mxu1 %v3632_v4 }
 0x635   :  { %3065 = vmatprep.subr.bf16.mxu1 %v3529_v0 }
 0x638   :  { %3067 = vmatpush3.bf16.msra.mxu1 %v3638_v7 }
 0x639   :  { %3068 = vmatprep.subr.bf16.mxu1 %v3529_v0 }
 0x63c   :  { %3070 = vmatpush3.bf16.msra.mxu1 %v3642_v10 }
 0x63d   :  { %3071 = vmatprep.subr.bf16.mxu1 %v3529_v0 }
 0x640   :  { %3073 = vmatpush3.bf16.msra.mxu1 %v3648_v12 }
 0x641   :  { %3074 = vmatprep.subr.bf16.mxu1 %v3529_v0 }
 0x6f6   :  { %v642_v15 = vpop.f32.mrb[8].mxu1 }
 0x6f7   :  { %3407 = vlog2.f32 %v642_v15  ;;  %v2343_v16 = vpop.f32.mrb[9].mxu1 }
 0x701   :  { %v3408_v17 = vpop.eup %3407 }
 0x702   :  { %v647_v19 = vmul.f32 0.6931472, %v3408_v17 }
 0x704   :  { %v648_v20 = vsub.f32 %v3681_v18, %v647_v19 }
 0x706   :  { %v649_v22 = vmul.f32 %v648_v20, %v3683_v21 }
 0x708   :  { %v650_v23 = vmul.f32 1.442695, %v649_v22 }
 0x70a   :  { %3409 = vpow2.f32 %v650_v23 }
 0x714   :  { %v3410_v24 = vpop.eup %3409 }
 0x715   :  { %2377 = vmatmul.mubr.f32.vlgmr.msra.gmra.mrb[4].mxu0 %v3410_v24 }
 0x716   :  { %3028 = vmatpush3.bf16.xpose.msra.mxu0 %v3608_v41  ;;  %2411 = vmatprep.mubr.msk.f32.mxu0 %vm3530_vm0, %v3531_v1 }
 0x717   :  { %3029 = vmatprep.subr.bf16.mxu0 %v3529_v0 }
 0x71e   :  { %3031 = vmatpush3.bf16.xpose.msra.mxu0 %v3616_v50 }
 0x71f   :  { %3032 = vmatprep.subr.bf16.mxu0 %v3529_v0 }
 0x726   :  { %3034 = vmatpush3.bf16.xpose.msra.mxu0 %v3622_v58 }
 0x727   :  { %3035 = vmatprep.subr.bf16.mxu0 %v3529_v0 }
 0x72e   :  { %3037 = vmatpush3.bf16.xpose.msra.mxu0 %v3628_v63 }
 0x72f   :  { %3038 = vmatprep.subr.bf16.mxu0 %v3529_v0 }
 0x736   :  { %3040 = vmatpush3.bf16.xpose.msra.mxu0 %v3632_v4 }
 0x737   :  { %3041 = vmatprep.subr.bf16.mxu0 %v3529_v0 }
 0x73e   :  { %3043 = vmatpush3.bf16.xpose.msra.mxu0 %v3638_v7 }
 0x73f   :  { %3044 = vmatprep.subr.bf16.mxu0 %v3529_v0 }
 0x746   :  { %3046 = vmatpush3.bf16.xpose.msra.mxu0 %v3642_v10 }
 0x747   :  { %3047 = vmatprep.subr.bf16.mxu0 %v3529_v0 }
 0x74e   :  { %3049 = vmatpush3.bf16.xpose.msra.mxu0 %v3648_v12 }
 0x74f   :  { %3098 = vmatprep.subr.bf16.mxu0 %v3529_v0 }
 0x7e8   :  { %v718_v25 = vpop.f32.mrb[4].mxu0 }
 0x7e9   :  { %3411 = vlog2.f32 %v718_v25  ;;  %v2378_v26 = vpop.f32.mrb[5].mxu0 }
 0x7f3   :  { %v3412_v27 = vpop.eup %3411 }
 0x7f4   :  { %v723_v28 = vmul.f32 0.6931472, %v3412_v27 }
 0x7f6   :  { %v724_v29 = vsub.f32 %v3708_v30, %v723_v28 }
 0x7f8   :  { %v725_v31 = vmul.f32 %v724_v29, %v3683_v21 }
 0x7fa   :  { %v726_v32 = vmul.f32 1.442695, %v725_v31 }
 0x7fc   :  { %3413 = vpow2.f32 %v726_v32 }
 0x806   :  { %v3414_v33 = vpop.eup %3413 }
 0x807   :  { %2412 = vmatmul.mubr.f32.vlgmr.msra.gmra.mrb[6].mxu0 %v3414_v33 }
 0x808   :  { %3100 = vmatpush3.bf16.msra.mxu0 %v3608_v41  ;;  %2516 = vmatprep.mubr.msk.f32.mxu0 %vm3530_vm0, %v3531_v1 }
 0x809   :  { %3101 = vmatprep.subr.bf16.mxu0 %v3529_v0 }
 0x80c   :  { %3103 = vmatpush3.bf16.msra.mxu0 %v3616_v50 }
 0x80d   :  { %3104 = vmatprep.subr.bf16.mxu0 %v3529_v0 }
 0x810   :  { %3106 = vmatpush3.bf16.msra.mxu0 %v3622_v58 }
 0x811   :  { %3107 = vmatprep.subr.bf16.mxu0 %v3529_v0 }
 0x814   :  { %3109 = vmatpush3.bf16.msra.mxu0 %v3628_v63 }
 0x815   :  { %3110 = vmatprep.subr.bf16.mxu0 %v3529_v0 }
 0x818   :  { %3112 = vmatpush3.bf16.msra.mxu0 %v3632_v4 }
 0x819   :  { %3113 = vmatprep.subr.bf16.mxu0 %v3529_v0 }
 0x81c   :  { %3115 = vmatpush3.bf16.msra.mxu0 %v3638_v7 }
 0x81d   :  { %3116 = vmatprep.subr.bf16.mxu0 %v3529_v0 }
 0x820   :  { %3118 = vmatpush3.bf16.msra.mxu0 %v3642_v10 }
 0x821   :  { %3119 = vmatprep.subr.bf16.mxu0 %v3529_v0 }
 0x824   :  { %3121 = vmatpush3.bf16.msra.mxu0 %v3648_v12 }
 0x825   :  { %3122 = vmatprep.subr.bf16.mxu0 %v3529_v0 }
 0x8da   :  { %v794_v34 = vpop.f32.mrb[6].mxu0 }
 0x8db   :  { %3415 = vlog2.f32 %v794_v34  ;;  %v2413_v35 = vpop.f32.mrb[7].mxu0 }
 0x8e5   :  { %v3416_v36 = vpop.eup %3415 }
 0x8e6   :  { %v799_v37 = vmul.f32 0.6931472, %v3416_v36 }
 0x8e8   :  { %v800_v38 = vsub.f32 %v3681_v18, %v799_v37 }
 0x8ea   :  { %v801_v39 = vmul.f32 %v800_v38, %v3683_v21 }
 0x8ec   :  { %v802_v40 = vmul.f32 1.442695, %v801_v39 }
 0x8ee   :  { %3417 = vpow2.f32 %v802_v40 }
 0x8f8   :  { %v3418_v42 = vpop.eup %3417 }
 0x8f9   :  { %2447 = vmatmul.mubr.f32.vlgmr.msra.gmra.mrb[10].mxu1 %v3418_v42 }
 0x8fa   :  { %3076 = vmatpush3.bf16.xpose.msra.mxu1 %v3608_v41  ;;  %2481 = vmatprep.mubr.msk.f32.mxu1 %vm3530_vm0, %v3531_v1 }
 0x8fb   :  { %3077 = vmatprep.subr.bf16.mxu1 %v3529_v0 }
 0x902   :  { %3079 = vmatpush3.bf16.xpose.msra.mxu1 %v3616_v50 }
 0x903   :  { %3080 = vmatprep.subr.bf16.mxu1 %v3529_v0 }
 0x90a   :  { %3082 = vmatpush3.bf16.xpose.msra.mxu1 %v3622_v58 }
 0x90b   :  { %3083 = vmatprep.subr.bf16.mxu1 %v3529_v0 }
 0x912   :  { %3085 = vmatpush3.bf16.xpose.msra.mxu1 %v3628_v63 }
 0x913   :  { %3086 = vmatprep.subr.bf16.mxu1 %v3529_v0 }
 0x91a   :  { %3088 = vmatpush3.bf16.xpose.msra.mxu1 %v3632_v4 }
 0x91b   :  { %3089 = vmatprep.subr.bf16.mxu1 %v3529_v0 }
 0x922   :  { %3091 = vmatpush3.bf16.xpose.msra.mxu1 %v3638_v7 }
 0x923   :  { %3092 = vmatprep.subr.bf16.mxu1 %v3529_v0 }
 0x92a   :  { %3094 = vmatpush3.bf16.xpose.msra.mxu1 %v3642_v10 }
 0x92b   :  { %3095 = vmatprep.subr.bf16.mxu1 %v3529_v0 }
 0x932   :  { %3097 = vmatpush3.bf16.xpose.msra.mxu1 %v3648_v12 }
 0x933   :  { %3146 = vmatprep.subr.bf16.mxu1 %v3529_v0 }
 0x9cc   :  { %v870_v43 = vpop.f32.mrb[10].mxu1 }
 0x9cd   :  { %3419 = vlog2.f32 %v870_v43  ;;  %v2448_v44 = vpop.f32.mrb[11].mxu1 }
 0x9d7   :  { %v3420_v45 = vpop.eup %3419 }
 0x9d8   :  { %v875_v46 = vmul.f32 0.6931472, %v3420_v45 }
 0x9da   :  { %v876_v47 = vsub.f32 %v3708_v30, %v875_v46 }
 0x9dc   :  { %v877_v48 = vmul.f32 %v876_v47, %v3683_v21 }
 0x9de   :  { %v878_v49 = vmul.f32 1.442695, %v877_v48 }
 0x9e0   :  { %3421 = vpow2.f32 %v878_v49 }
 0x9ea   :  { %v3422_v51 = vpop.eup %3421 }
 0x9eb   :  { %2482 = vmatmul.mubr.f32.vlgmr.msra.gmra.mrb[12].mxu1 %v3422_v51 }
 0x9ec   :  { %3148 = vmatpush3.bf16.msra.mxu1 %v3608_v41  ;;  %2586 = vmatprep.mubr.msk.f32.mxu1 %vm3530_vm0, %v3531_v1 }
 0x9ed   :  { %3149 = vmatprep.subr.bf16.mxu1 %v3529_v0 }
 0x9f0   :  { %3151 = vmatpush3.bf16.msra.mxu1 %v3616_v50 }
 0x9f1   :  { %3152 = vmatprep.subr.bf16.mxu1 %v3529_v0 }
 0x9f4   :  { %3154 = vmatpush3.bf16.msra.mxu1 %v3622_v58 }
 0x9f5   :  { %3155 = vmatprep.subr.bf16.mxu1 %v3529_v0 }
 0x9f8   :  { %3157 = vmatpush3.bf16.msra.mxu1 %v3628_v63 }
 0x9f9   :  { %3158 = vmatprep.subr.bf16.mxu1 %v3529_v0 }
 0x9fc   :  { %3160 = vmatpush3.bf16.msra.mxu1 %v3632_v4 }
 0x9fd   :  { %3161 = vmatprep.subr.bf16.mxu1 %v3529_v0 }
 0xa00   :  { %3163 = vmatpush3.bf16.msra.mxu1 %v3638_v7 }
 0xa01   :  { %3164 = vmatprep.subr.bf16.mxu1 %v3529_v0 }
 0xa04   :  { %3166 = vmatpush3.bf16.msra.mxu1 %v3642_v10 }
 0xa05   :  { %3167 = vmatprep.subr.bf16.mxu1 %v3529_v0 }
 0xa08   :  { %3169 = vmatpush3.bf16.msra.mxu1 %v3648_v12 }
 0xa09   :  { %3170 = vmatprep.subr.bf16.mxu1 %v3529_v0 }
 0xabe   :  { %v946_v52 = vpop.f32.mrb[12].mxu1 }
 0xabf   :  { %3423 = vlog2.f32 %v946_v52  ;;  %v2483_v53 = vpop.f32.mrb[13].mxu1 }
 0xac9   :  { %v3424_v54 = vpop.eup %3423 }
 0xaca   :  { %v951_v55 = vmul.f32 0.6931472, %v3424_v54 }
 0xacc   :  { %v952_v56 = vsub.f32 %v3681_v18, %v951_v55 }
 0xace   :  { %v953_v57 = vmul.f32 %v952_v56, %v3683_v21 }
 0xad0   :  { %v954_v59 = vmul.f32 1.442695, %v953_v57 }
 0xad2   :  { %3425 = vpow2.f32 %v954_v59 }
 0xadc   :  { %v3426_v60 = vpop.eup %3425 }
 0xadd   :  { %2517 = vmatmul.mubr.f32.vlgmr.msra.gmra.mrb[8].mxu0 %v3426_v60 }
 0xade   :  { %3124 = vmatpush3.bf16.xpose.msra.mxu0 %v3608_v41  ;;  %2551 = vmatprep.mubr.msk.f32.mxu0 %vm3530_vm0, %v3531_v1 }
 0xadf   :  { %3125 = vmatprep.subr.bf16.mxu0 %v3529_v0 }
 0xae6   :  { %3127 = vmatpush3.bf16.xpose.msra.mxu0 %v3616_v50 }
 0xae7   :  { %3128 = vmatprep.subr.bf16.mxu0 %v3529_v0 }
 0xaee   :  { %3130 = vmatpush3.bf16.xpose.msra.mxu0 %v3622_v58 }
 0xaef   :  { %3131 = vmatprep.subr.bf16.mxu0 %v3529_v0 }
 0xaf6   :  { %3133 = vmatpush3.bf16.xpose.msra.mxu0 %v3628_v63 }
 0xaf7   :  { %3134 = vmatprep.subr.bf16.mxu0 %v3529_v0 }
 0xafe   :  { %3136 = vmatpush3.bf16.xpose.msra.mxu0 %v3632_v4 }
 0xaff   :  { %3137 = vmatprep.subr.bf16.mxu0 %v3529_v0 }
 0xb06   :  { %3139 = vmatpush3.bf16.xpose.msra.mxu0 %v3638_v7 }
 0xb07   :  { %3140 = vmatprep.subr.bf16.mxu0 %v3529_v0 }
 0xb0e   :  { %3142 = vmatpush3.bf16.xpose.msra.mxu0 %v3642_v10 }
 0xb0f   :  { %3143 = vmatprep.subr.bf16.mxu0 %v3529_v0 }
 0xb16   :  { %3145 = vmatpush3.bf16.xpose.msra.mxu0 %v3648_v12 }
 0xb17   :  { %3194 = vmatprep.subr.bf16.mxu0 %v3529_v0 }
 0xbb0   :  { %v1022_v61 = vpop.f32.mrb[8].mxu0 }
 0xbb1   :  { %3427 = vlog2.f32 %v1022_v61  ;;  %v2518_v62 = vpop.f32.mrb[9].mxu0 }
 0xbbb   :  { %v3428_v2 = vpop.eup %3427 }
 0xbbc   :  { %v1027_v3 = vmul.f32 0.6931472, %v3428_v2 }
 0xbbe   :  { %v1028_v5 = vsub.f32 %v3708_v30, %v1027_v3 }
 0xbc0   :  { %v1029_v6 = vmul.f32 %v1028_v5, %v3683_v21 }
 0xbc2   :  { %v1030_v8 = vmul.f32 1.442695, %v1029_v6 }
 0xbc4   :  { %3429 = vpow2.f32 %v1030_v8 }
 0xbce   :  { %v3430_v9 = vpop.eup %3429 }
 0xbcf   :  { %2552 = vmatmul.mubr.f32.vlgmr.msra.gmra.mrb[10].mxu0 %v3430_v9 }
 0xbd0   :  { %3196 = vmatpush3.bf16.msra.mxu0 %v3608_v41  ;;  %2656 = vmatprep.mubr.msk.f32.mxu0 %vm3530_vm0, %v3531_v1 }
 0xbd1   :  { %3197 = vmatprep.subr.bf16.mxu0 %v3529_v0 }
 0xbd4   :  { %3199 = vmatpush3.bf16.msra.mxu0 %v3616_v50 }
 0xbd5   :  { %3200 = vmatprep.subr.bf16.mxu0 %v3529_v0 }
 0xbd8   :  { %3202 = vmatpush3.bf16.msra.mxu0 %v3622_v58 }
 0xbd9   :  { %3203 = vmatprep.subr.bf16.mxu0 %v3529_v0 }
 0xbdc   :  { %3205 = vmatpush3.bf16.msra.mxu0 %v3628_v63 }
 0xbdd   :  { %3206 = vmatprep.subr.bf16.mxu0 %v3529_v0 }
 0xbe0   :  { %3208 = vmatpush3.bf16.msra.mxu0 %v3632_v4 }
 0xbe1   :  { %3209 = vmatprep.subr.bf16.mxu0 %v3529_v0 }
 0xbe4   :  { %3211 = vmatpush3.bf16.msra.mxu0 %v3638_v7 }
 0xbe5   :  { %3212 = vmatprep.subr.bf16.mxu0 %v3529_v0 }
 0xbe8   :  { %3214 = vmatpush3.bf16.msra.mxu0 %v3642_v10 }
 0xbe9   :  { %3215 = vmatprep.subr.bf16.mxu0 %v3529_v0 }
 0xbec   :  { %3217 = vmatpush3.bf16.msra.mxu0 %v3648_v12 }
 0xbed   :  { %3218 = vmatprep.subr.bf16.mxu0 %v3529_v0 }
 0xca2   :  { %v1098_v11 = vpop.f32.mrb[10].mxu0 }
 0xca3   :  { %3431 = vlog2.f32 %v1098_v11  ;;  %v2553_v13 = vpop.f32.mrb[11].mxu0 }
 0xcad   :  { %v3432_v14 = vpop.eup %3431 }
 0xcae   :  { %v1103_v15 = vmul.f32 0.6931472, %v3432_v14 }
 0xcb0   :  { %v1104_v16 = vsub.f32 %v3681_v18, %v1103_v15 }
 0xcb2   :  { %v1105_v17 = vmul.f32 %v1104_v16, %v3683_v21 }
 0xcb4   :  { %v1106_v19 = vmul.f32 1.442695, %v1105_v17  ;;  %v1642_v17 = vlaneseq }
 0xcb6   :  { %3433 = vpow2.f32 %v1106_v19 }
 0xcc0   :  { %v3434_v20 = vpop.eup %3433 }
 0xcc1   :  { %2587 = vmatmul.mubr.f32.vlgmr.msra.gmra.mrb[14].mxu1 %v3434_v20 }
 0xcc2   :  { %3172 = vmatpush3.bf16.xpose.msra.mxu1 %v3608_v41  ;;  %2621 = vmatprep.mubr.msk.f32.mxu1 %vm3530_vm0, %v3531_v1 }
 0xcc3   :  { %3173 = vmatprep.subr.bf16.mxu1 %v3529_v0 }
 0xcca   :  { %3175 = vmatpush3.bf16.xpose.msra.mxu1 %v3616_v50 }
 0xccb   :  { %3176 = vmatprep.subr.bf16.mxu1 %v3529_v0 }
 0xcd2   :  { %3178 = vmatpush3.bf16.xpose.msra.mxu1 %v3622_v58 }
 0xcd3   :  { %3179 = vmatprep.subr.bf16.mxu1 %v3529_v0 }
 0xcda   :  { %3181 = vmatpush3.bf16.xpose.msra.mxu1 %v3628_v63 }
 0xcdb   :  { %3182 = vmatprep.subr.bf16.mxu1 %v3529_v0 }
 0xce2   :  { %3184 = vmatpush3.bf16.xpose.msra.mxu1 %v3632_v4 }
 0xce3   :  { %3185 = vmatprep.subr.bf16.mxu1 %v3529_v0 }
 0xcea   :  { %3187 = vmatpush3.bf16.xpose.msra.mxu1 %v3638_v7 }
 0xceb   :  { %3188 = vmatprep.subr.bf16.mxu1 %v3529_v0 }
 0xcf2   :  { %3190 = vmatpush3.bf16.xpose.msra.mxu1 %v3642_v10 }
 0xcf3   :  { %3191 = vmatprep.subr.bf16.mxu1 %v3529_v0 }
 0xcfa   :  { %3193 = vmatpush3.bf16.xpose.msra.mxu1 %v3648_v12 }
 0xcfb   :  { %3242 = vmatprep.subr.bf16.mxu1 %v3529_v0 }
 0xd94   :  { %v1174_v22 = vpop.f32.mrb[14].mxu1 }
 0xd95   :  { %3435 = vlog2.f32 %v1174_v22  ;;  %v2588_v23 = vpop.f32.mrb[15].mxu1 }
 0xd9f   :  { %v3436_v24 = vpop.eup %3435 }
 0xda0   :  { %v1179_v25 = vmul.f32 0.6931472, %v3436_v24 }
 0xda2   :  { %v1180_v26 = vsub.f32 %v3708_v30, %v1179_v25 }
 0xda4   :  { %v1181_v27 = vmul.f32 %v1180_v26, %v3683_v21 }
 0xda6   :  { %v1182_v28 = vmul.f32 1.442695, %v1181_v27 }
 0xda8   :  { %3437 = vpow2.f32 %v1182_v28 }
 0xdb2   :  { %v3438_v29 = vpop.eup %3437 }
 0xdb3   :  { %2622 = vmatmul.mubr.f32.vlgmr.msra.gmra.mrb[16].mxu1 %v3438_v29 }
 0xdb4   :  { %3244 = vmatpush3.bf16.msra.mxu1 %v3608_v41  ;;  %2726 = vmatprep.mubr.msk.f32.mxu1 %vm3530_vm0, %v3531_v1 }
 0xdb5   :  { %3245 = vmatprep.subr.bf16.mxu1 %v3529_v0 }
 0xdb8   :  { %3247 = vmatpush3.bf16.msra.mxu1 %v3616_v50 }
 0xdb9   :  { %3248 = vmatprep.subr.bf16.mxu1 %v3529_v0 }
 0xdbc   :  { %3250 = vmatpush3.bf16.msra.mxu1 %v3622_v58 }
 0xdbd   :  { %3251 = vmatprep.subr.bf16.mxu1 %v3529_v0 }
 0xdc0   :  { %3253 = vmatpush3.bf16.msra.mxu1 %v3628_v63 }
 0xdc1   :  { %3254 = vmatprep.subr.bf16.mxu1 %v3529_v0 }
 0xdc4   :  { %3256 = vmatpush3.bf16.msra.mxu1 %v3632_v4 }
 0xdc5   :  { %3257 = vmatprep.subr.bf16.mxu1 %v3529_v0 }
 0xdc8   :  { %3259 = vmatpush3.bf16.msra.mxu1 %v3638_v7 }
 0xdc9   :  { %3260 = vmatprep.subr.bf16.mxu1 %v3529_v0 }
 0xdcc   :  { %3262 = vmatpush3.bf16.msra.mxu1 %v3642_v10 }
 0xdcd   :  { %3263 = vmatprep.subr.bf16.mxu1 %v3529_v0 }
 0xdd0   :  { %3265 = vmatpush3.bf16.msra.mxu1 %v3648_v12 }
 0xdd1   :  { %3266 = vmatprep.subr.bf16.mxu1 %v3529_v0 }
 0xe86   :  { %v1250_v31 = vpop.f32.mrb[16].mxu1 }
 0xe87   :  { %3439 = vlog2.f32 %v1250_v31  ;;  %v2623_v32 = vpop.f32.mrb[17].mxu1 }
 0xe91   :  { %v3440_v33 = vpop.eup %3439 }
 0xe92   :  { %v1255_v34 = vmul.f32 0.6931472, %v3440_v33 }
 0xe94   :  { %v1256_v35 = vsub.f32 %v3681_v18, %v1255_v34 }
 0xe96   :  { %v1257_v36 = vmul.f32 %v1256_v35, %v3683_v21 }
 0xe98   :  { %v1258_v37 = vmul.f32 1.442695, %v1257_v36 }
 0xe9a   :  { %3441 = vpow2.f32 %v1258_v37 }
 0xea4   :  { %v3442_v38 = vpop.eup %3441 }
 0xea5   :  { %2657 = vmatmul.mubr.f32.vlgmr.msra.gmra.mrb[12].mxu0 %v3442_v38 }
 0xea6   :  { %3220 = vmatpush3.bf16.xpose.msra.mxu0 %v3608_v41  ;;  %2691 = vmatprep.mubr.msk.f32.mxu0 %vm3530_vm0, %v3531_v1 }
 0xea7   :  { %3221 = vmatprep.subr.bf16.mxu0 %v3529_v0 }
 0xeae   :  { %3223 = vmatpush3.bf16.xpose.msra.mxu0 %v3616_v50 }
 0xeaf   :  { %3224 = vmatprep.subr.bf16.mxu0 %v3529_v0 }
 0xeb6   :  { %3226 = vmatpush3.bf16.xpose.msra.mxu0 %v3622_v58 }
 0xeb7   :  { %3227 = vmatprep.subr.bf16.mxu0 %v3529_v0 }
 0xebe   :  { %3229 = vmatpush3.bf16.xpose.msra.mxu0 %v3628_v63 }
 0xebf   :  { %3230 = vmatprep.subr.bf16.mxu0 %v3529_v0 }
 0xec6   :  { %3232 = vmatpush3.bf16.xpose.msra.mxu0 %v3632_v4 }
 0xec7   :  { %3233 = vmatprep.subr.bf16.mxu0 %v3529_v0 }
 0xece   :  { %3235 = vmatpush3.bf16.xpose.msra.mxu0 %v3638_v7 }
 0xecf   :  { %3236 = vmatprep.subr.bf16.mxu0 %v3529_v0 }
 0xed6   :  { %3238 = vmatpush3.bf16.xpose.msra.mxu0 %v3642_v10 }
 0xed7   :  { %3239 = vmatprep.subr.bf16.mxu0 %v3529_v0 }
 0xede   :  { %3241 = vmatpush3.bf16.xpose.msra.mxu0 %v3648_v12 }
 0xedf   :  { %3290 = vmatprep.subr.bf16.mxu0 %v3529_v0 }
 0xf78   :  { %v1326_v39 = vpop.f32.mrb[12].mxu0 }
 0xf79   :  { %3443 = vlog2.f32 %v1326_v39  ;;  %v2658_v40 = vpop.f32.mrb[13].mxu0 }
 0xf83   :  { %v3444_v42 = vpop.eup %3443 }
 0xf84   :  { %v1331_v43 = vmul.f32 0.6931472, %v3444_v42 }
 0xf86   :  { %v1332_v44 = vsub.f32 %v3708_v30, %v1331_v43 }
 0xf88   :  { %v1333_v45 = vmul.f32 %v1332_v44, %v3683_v21 }
 0xf8a   :  { %v1334_v46 = vmul.f32 1.442695, %v1333_v45 }
 0xf8c   :  { %3445 = vpow2.f32 %v1334_v46 }
 0xf96   :  { %v3446_v47 = vpop.eup %3445 }
 0xf97   :  { %2692 = vmatmul.mubr.f32.vlgmr.msra.gmra.mrb[14].mxu0 %v3446_v47 }
 0xf98   :  { %3292 = vmatpush3.bf16.msra.mxu0 %v3608_v41  ;;  %2796 = vmatprep.mubr.msk.f32.mxu0 %vm3530_vm0, %v3531_v1 }
 0xf99   :  { %3293 = vmatprep.subr.bf16.mxu0 %v3529_v0 }
 0xf9c   :  { %3295 = vmatpush3.bf16.msra.mxu0 %v3616_v50 }
 0xf9d   :  { %3296 = vmatprep.subr.bf16.mxu0 %v3529_v0 }
 0xfa0   :  { %3298 = vmatpush3.bf16.msra.mxu0 %v3622_v58 }
 0xfa1   :  { %3299 = vmatprep.subr.bf16.mxu0 %v3529_v0 }
 0xfa4   :  { %3301 = vmatpush3.bf16.msra.mxu0 %v3628_v63 }
 0xfa5   :  { %3302 = vmatprep.subr.bf16.mxu0 %v3529_v0 }
 0xfa8   :  { %3304 = vmatpush3.bf16.msra.mxu0 %v3632_v4 }
 0xfa9   :  { %3305 = vmatprep.subr.bf16.mxu0 %v3529_v0 }
 0xfac   :  { %3307 = vmatpush3.bf16.msra.mxu0 %v3638_v7 }
 0xfad   :  { %3308 = vmatprep.subr.bf16.mxu0 %v3529_v0 }
 0xfb0   :  { %3310 = vmatpush3.bf16.msra.mxu0 %v3642_v10 }
 0xfb1   :  { %3311 = vmatprep.subr.bf16.mxu0 %v3529_v0 }
 0xfb4   :  { %3313 = vmatpush3.bf16.msra.mxu0 %v3648_v12 }
 0xfb5   :  { %3314 = vmatprep.subr.bf16.mxu0 %v3529_v0 }
0x106a   :  { %v1402_v48 = vpop.f32.mrb[14].mxu0 }
0x106b   :  { %3447 = vlog2.f32 %v1402_v48  ;;  %v2693_v49 = vpop.f32.mrb[15].mxu0 }
0x1075   :  { %v3448_v51 = vpop.eup %3447 }
0x1076   :  { %v1407_v52 = vmul.f32 0.6931472, %v3448_v51 }
0x1078   :  { %v1408_v53 = vsub.f32 %v3681_v18, %v1407_v52 }
0x107a   :  { %v1409_v54 = vmul.f32 %v1408_v53, %v3683_v21 }
0x107c   :  { %v1410_v55 = vmul.f32 1.442695, %v1409_v54 }
0x107e   :  { %3449 = vpow2.f32 %v1410_v55 }
0x1088   :  { %v3450_v56 = vpop.eup %3449 }
0x1089   :  { %2727 = vmatmul.mubr.f32.vlgmr.msra.gmra.mrb[18].mxu1 %v3450_v56 }
0x108a   :  { %3268 = vmatpush3.bf16.xpose.msra.mxu1 %v3608_v41  ;;  %2761 = vmatprep.mubr.msk.f32.mxu1 %vm3530_vm0, %v3531_v1 }
0x108b   :  { %3269 = vmatprep.subr.bf16.mxu1 %v3529_v0 }
0x1092   :  { %3271 = vmatpush3.bf16.xpose.msra.mxu1 %v3616_v50 }
0x1093   :  { %3272 = vmatprep.subr.bf16.mxu1 %v3529_v0 }
0x109a   :  { %3274 = vmatpush3.bf16.xpose.msra.mxu1 %v3622_v58 }
0x109b   :  { %3275 = vmatprep.subr.bf16.mxu1 %v3529_v0 }
0x10a2   :  { %3277 = vmatpush3.bf16.xpose.msra.mxu1 %v3628_v63 }
0x10a3   :  { %3278 = vmatprep.subr.bf16.mxu1 %v3529_v0 }
0x10aa   :  { %3280 = vmatpush3.bf16.xpose.msra.mxu1 %v3632_v4 }
0x10ab   :  { %3281 = vmatprep.subr.bf16.mxu1 %v3529_v0 }
0x10b2   :  { %3283 = vmatpush3.bf16.xpose.msra.mxu1 %v3638_v7 }
0x10b3   :  { %3284 = vmatprep.subr.bf16.mxu1 %v3529_v0 }
0x10ba   :  { %3286 = vmatpush3.bf16.xpose.msra.mxu1 %v3642_v10 }
0x10bb   :  { %3287 = vmatprep.subr.bf16.mxu1 %v3529_v0 }
0x10c2   :  { %3289 = vmatpush3.bf16.xpose.msra.mxu1 %v3648_v12 }
0x115c   :  { %v1478_v57 = vpop.f32.mrb[18].mxu1 }
0x115d   :  { %3451 = vlog2.f32 %v1478_v57  ;;  %v2728_v59 = vpop.f32.mrb[19].mxu1 }
0x1167   :  { %v3452_v60 = vpop.eup %3451 }
0x1168   :  { %v1483_v61 = vmul.f32 0.6931472, %v3452_v60 }
0x116a   :  { %v1484_v62 = vsub.f32 %v3708_v30, %v1483_v61 }
0x116c   :  { %v1485_v2 = vmul.f32 %v1484_v62, %v3683_v21 }
0x116e   :  { %v1486_v3 = vmul.f32 1.442695, %v1485_v2 }
0x1170   :  { %3453 = vpow2.f32 %v1486_v3 }
0x117a   :  { %v3454_v5 = vpop.eup %3453 }
0x117b   :  { %2762 = vmatmul.mubr.f32.vlgmr.msra.gmra.mrb[20].mxu1 %v3454_v5 }
0x124e   :  { %v1554_v6 = vpop.f32.mrb[20].mxu1 }
0x124f   :  { %3455 = vlog2.f32 %v1554_v6  ;;  %v2763_v8 = vpop.f32.mrb[21].mxu1 }
0x1259   :  { %v3456_v9 = vpop.eup %3455 }
0x125a   :  { %v1559_v11 = vmul.f32 0.6931472, %v3456_v9 }
0x125c   :  { %v1560_v13 = vsub.f32 %v3681_v18, %v1559_v11 }
0x125e   :  { %v1561_v14 = vmul.f32 %v1560_v13, %v3683_v21 }
0x1260   :  { %v1562_v15 = vmul.f32 1.442695, %v1561_v14 }
0x1262   :  { %3457 = vpow2.f32 %v1562_v15 }
0x126c   :  { %v3458_v16 = vpop.eup %3457 }
0x126d   :  { %2797 = vmatmul.mubr.f32.vlgmr.msra.gmra.mrb[16].mxu0 %v3458_v16 }
0x126e   :  { %3316 = vmatpush3.bf16.xpose.msra.mxu0 %v3608_v41  ;;  %2831 = vmatprep.mubr.msk.f32.mxu0 %vm3530_vm0, %v3531_v1 }
0x126f   :  { %3317 = vmatprep.subr.bf16.mxu0 %v3529_v0 }
0x1276   :  { %3319 = vmatpush3.bf16.xpose.msra.mxu0 %v3616_v50 }
0x1277   :  { %3320 = vmatprep.subr.bf16.mxu0 %v3529_v0 }
0x127e   :  { %3322 = vmatpush3.bf16.xpose.msra.mxu0 %v3622_v58 }
0x127f   :  { %3323 = vmatprep.subr.bf16.mxu0 %v3529_v0 }
0x1286   :  { %3325 = vmatpush3.bf16.xpose.msra.mxu0 %v3628_v63 }
0x1287   :  { %3326 = vmatprep.subr.bf16.mxu0 %v3529_v0 }
0x128e   :  { %3328 = vmatpush3.bf16.xpose.msra.mxu0 %v3632_v4 }
0x128f   :  { %3329 = vmatprep.subr.bf16.mxu0 %v3529_v0 }
0x1296   :  { %3331 = vmatpush3.bf16.xpose.msra.mxu0 %v3638_v7  ;;  %v1643_v7 = vshrl.u32 %v1642_v17, 7 }
0x1297   :  { %3332 = vmatprep.subr.bf16.mxu0 %v3529_v0 }
0x1298   :  { %v1644_v19 = vsub.s32 0, %v1643_v7  ;;  %v1720_v22 = vsub.s32 2, %v1643_v7 }
0x129e   :  { %3334 = vmatpush3.bf16.xpose.msra.mxu0 %v3642_v10 }
0x129f   :  { %3335 = vmatprep.subr.bf16.mxu0 %v3529_v0  ;;  %v1640_v0 = vld [vmem:[%s4071_s4] sm:$0x7] }
0x12a6   :  { %3337 = vmatpush3.bf16.xpose.msra.mxu0 %v3648_v12 }
0x1340   :  { %v1630_v1 = vpop.f32.mrb[16].mxu0 }
0x1341   :  { %3459 = vlog2.f32 %v1630_v1  ;;  %v2798_v41 = vpop.f32.mrb[17].mxu0 }
0x134b   :  { %v3460_v50 = vpop.eup %3459 }
0x134c   :  { %v1635_v58 = vmul.f32 0.6931472, %v3460_v50 }
0x134e   :  { %v1636_v63 = vsub.f32 %v3708_v30, %v1635_v58 }
0x1350   :  { %v1637_v4 = vmul.f32 %v1636_v63, %v3683_v21 }
0x1352   :  { %v1638_v18 = vmul.f32 1.442695, %v1637_v4 }
0x1354   :  { %3461 = vpow2.f32 %v1638_v18 }
0x135e   :  { %v3462_v20 = vpop.eup %3461 }
0x135f   :  { %v1645_v10 = vrot.slane %v3462_v20, %v1644_v19 }
0x1361   :  { %v1647_v12 = vmul.f32 %v1645_v10, %v1640_v0 }
0x1363   :  { %2832 = vmatmul.mubr.f32.vlgmr.msra.gmra.mrb[18].mxu0 %v1647_v12 }
0x1436   :  { %v1714_v23 = vpop.f32.mrb[18].mxu0 }
0x1437   :  { %v1721_v24 = vrot.slane %v1714_v23, %v1720_v22  ;;  %v2833_v25 = vpop.f32.mrb[19].mxu0 }
0x1439   :  { %3463 = vrcp.f32 %v1721_v24 }
0x1443   :  { %v3464_v21 = vpop.eup %3463 }
0x1444   :  { %v1723_v30 = vmul.f32 %v3464_v21, %v1714_v23 }
0x1446   :  { %1724 = vst [vmem:[#allocation7] sm:$0x3] %v1723_v30 }
0x1447   :  { %3508 = shalt.err (!%p3505_p1)
}
0x1448   :  { %s3509_s25 = scalar_lea.hbm %s4072_s5, 32 }
0x1449   :  { %p3510_p2 = scmp.ne.s32.totalorder %s4072_s5, %s3509_s25  ;;  %p3513_p3 = scmp.lt.u32.totalorder %s3509_s25, %s4072_s5 }
0x144b   :  { %p3515_p4 = pnand %p3513_p3, %p3510_p2 }
0x144d   :  { %3518 = shalt.err (!%p3515_p4)
}
0x144e   :  { %1734 = dma.vmem_to_hbm [thread:$0]  %s1732_s22, 32, %s4072_s5, [#allocation4]  }
0x144f   :  { %3523 = dma.done.wait [#allocation4], 32  }
0x1450   :  { %3524 = vsyncadd [#allocation4], 4294967264 }
0x1451   :  { %1738 = vsyncpa [#allocation3], 1 }
0x1452   :  { %1739 = vsyncpa [#allocation4], 1 }
0x1453   :  { %1740 = vsyncpa [#allocation5], 1 }

</bundles_post_ra>
